<compile_context>
chip_gen: v6e
topology: v6e:2x2x1
jax: 0.10.0
libtpu: 0.0.40
codegen_flags: <defaults>
</compile_context>

<pallas_src>
import functools

import jax
import jax.numpy as jnp
from jax.experimental import pallas as pl
from jax.experimental.pallas import tpu as pltpu

LANE = 128   # vreg lane width
SUB = 8      # f32 sublane tile


def _round_up(n, m):
    return ((n + m - 1) // m) * m


def _mlp_kernel(x_ref, wb1_ref, wb2_ref, wb3_ref, o_ref, *, k1, k2, k3):
    # Each wb slab = [W^T (k rows, zero padded) ; bias tile (SUB rows, bias in row 0)].
    # Layer 1: Linear + ReLU
    h = jnp.dot(x_ref[...], wb1_ref[:k1, :], preferred_element_type=jnp.float32)
    h = jnp.maximum(h + wb1_ref[k1:k1 + 1, :], 0.0)
    # Layer 2: Linear + ReLU
    h = jnp.dot(h, wb2_ref[:k2, :], preferred_element_type=jnp.float32)
    h = jnp.maximum(h + wb2_ref[k2:k2 + 1, :], 0.0)
    # Layer 3: Linear (no activation)
    h = jnp.dot(h, wb3_ref[:k3, :], preferred_element_type=jnp.float32)
    o_ref[...] = (h + wb3_ref[k3:k3 + 1, :]).astype(o_ref.dtype)


def _pack_layer(w, b):
    """PyTorch-layout (out_f, in_f) weight + (out_f,) bias -> one lane-dense slab.

    Returns a (round_up(in_f,128) + 8, round_up(out_f,128)) f32 array:
      rows [0:k_pad] = W^T zero-padded, row k_pad = bias zero-padded, rest zeros.
    """
    out_f, in_f = w.shape
    k_pad = _round_up(in_f, LANE)   # must match the lane-padded activation width
    n_pad = _round_up(out_f, LANE)
    slab = jnp.zeros((k_pad + SUB, n_pad), jnp.float32)
    slab = slab.at[:in_f, :out_f].set(w.T.astype(jnp.float32))
    slab = slab.at[k_pad, :out_f].set(jnp.reshape(b, (-1,)).astype(jnp.float32))
    return slab


@jax.jit
def small_net_forward(x, params):
    """Forward pass of smallNet. x: (batch, in_dim); params: 3x (w, b), torch layout."""
    (w1, b1), (w2, b2), (w3, b3) = params
    batch, in_dim = x.shape
    out_dim = w3.shape[0]

    # Wrapper-side layout plumbing (free): lane-dense, pre-transposed operands.
    wb1, wb2, wb3 = _pack_layer(w1, b1), _pack_layer(w2, b2), _pack_layer(w3, b3)
    in_pad = _round_up(in_dim, LANE)
    n_pad = wb3.shape[1]

    # Batch tiling: up to 256 rows per grid step; the "parallel" axis lets big
    # batches amortize launch/DMA overhead and shard over v7x's 2 TensorCores.
    bt = min(256, _round_up(batch, SUB))
    batch_pad = _round_up(batch, bt)
    x_pad = jnp.zeros((batch_pad, in_pad), jnp.float32)
    x_pad = x_pad.at[:batch, :in_dim].set(x.astype(jnp.float32))

    kernel = functools.partial(
        _mlp_kernel,
        k1=wb1.shape[0] - SUB, k2=wb2.shape[0] - SUB, k3=wb3.shape[0] - SUB)

    out_pad = pl.pallas_call(
        kernel,
        out_shape=jax.ShapeDtypeStruct((batch_pad, n_pad), jnp.float32),
        grid=(batch_pad // bt,),
        in_specs=[
            pl.BlockSpec((bt, in_pad), lambda i: (i, 0)),
            pl.BlockSpec(wb1.shape, lambda i: (0, 0)),   # weights stay VMEM-resident
            pl.BlockSpec(wb2.shape, lambda i: (0, 0)),
            pl.BlockSpec(wb3.shape, lambda i: (0, 0)),
        ],
        out_specs=pl.BlockSpec((bt, n_pad), lambda i: (i, 0)),
        compiler_params=pltpu.CompilerParams(dimension_semantics=("parallel",)),
    )(x_pad, wb1, wb2, wb3)

    # Slice the zero padding back off (wrapper-side, exact).
    return out_pad[:batch, :out_dim]


def init_small_net_params(key, in_dim, out_dim, hidden_dims=None, random_bias=False):
    """Shapes mirror smallNet.__init__; weights follow weights_init_uniform_rule
    (U(-1/sqrt(fan_in), 1/sqrt(fan_in))); bias=0 per the rule unless random_bias."""
    if hidden_dims is None:
        hidden_dims = [5, 5]
    dims = [in_dim] + hidden_dims + [out_dim]
    params = []
    for i in range(len(dims) - 1):
        key, kw, kb = jax.random.split(key, 3)
        fan_in, fan_out = dims[i], dims[i + 1]
        bound = 1.0 / (fan_in ** 0.5)
        w = jax.random.uniform(kw, (fan_out, fan_in), jnp.float32,
                               minval=-bound, maxval=bound)
        if random_bias:
            b = jax.random.uniform(kb, (fan_out,), jnp.float32,
                                   minval=-bound, maxval=bound)
        else:
            b = jnp.zeros((fan_out,), jnp.float32)
        params.append((w, b))
    return params


if __name__ == "__main__":
    key = jax.random.PRNGKey(0)
    batch, in_dim, out_dim = 8, 32, 4

    k_x, k_p = jax.random.split(key)
    x = jax.random.normal(k_x, (batch, in_dim), jnp.float32)
    # random_bias=True exercises the bias-add path (the module's reset rule zeroes it).
    params = init_small_net_params(k_p, in_dim, out_dim, random_bias=True)

    out = small_net_forward(x, params)
    jax.block_until_ready(out)

    # Pure-JAX reference: same math as the PyTorch forward (x @ W.T + b, ReLU).
    (w1, b1), (w2, b2), (w3, b3) = params
    ref = jnp.maximum(x @ w1.T + b1, 0.0)
    ref = jnp.maximum(ref @ w2.T + b2, 0.0)
    ref = ref @ w3.T + b3

    assert out.shape == (batch, out_dim)
    assert jnp.allclose(out, ref, atol=1e-5, rtol=1e-5), float(jnp.max(jnp.abs(out - ref)))

    print("KERNEL_OK")
</pallas_src>

<mosaic_0001>
module attributes {stable_mosaic.version = 11 : i64} {
  func.func @_mlp_kernel(%arg0: i32, %arg1: memref<8x128xf32, #tpu.memory_space<vmem>>, %arg2: memref<136x128xf32, #tpu.memory_space<vmem>>, %arg3: memref<136x128xf32, #tpu.memory_space<vmem>>, %arg4: memref<136x128xf32, #tpu.memory_space<vmem>>, %arg5: memref<8x128xf32, #tpu.memory_space<vmem>>) attributes {dimension_semantics = [#tpu.dimension_semantics<parallel>], iteration_bounds = array<i64: 1>, scalar_prefetch = 0 : i64, scratch_operands = 0 : i64, tpu.core_type = #tpu.core_type<tc>, window_params = [{transform_indices = @transform_0, window_bounds = array<i64: 8, 128>}, {pipeline_mode = #tpu.pipeline_mode<synchronous>, transform_indices = @transform_1, window_bounds = array<i64: 136, 128>}, {pipeline_mode = #tpu.pipeline_mode<synchronous>, transform_indices = @transform_2, window_bounds = array<i64: 136, 128>}, {pipeline_mode = #tpu.pipeline_mode<synchronous>, transform_indices = @transform_3, window_bounds = array<i64: 136, 128>}, {transform_indices = @transform_4, window_bounds = array<i64: 8, 128>}]} {
    %c0 = arith.constant 0 : index
    %c0_0 = arith.constant 0 : index
    %0 = vector.load %arg1[%c0, %c0_0] : memref<8x128xf32, #tpu.memory_space<vmem>>, vector<8x128xf32>
    %c0_1 = arith.constant 0 : index
    %c0_2 = arith.constant 0 : index
    %1 = vector.load %arg2[%c0_1, %c0_2] : memref<136x128xf32, #tpu.memory_space<vmem>>, vector<128x128xf32>
    %cst = arith.constant dense<0.000000e+00> : vector<8x128xf32>
    %2 = tpu.matmul %0, %1, %cst {dimension_numbers = #tpu.dot_dimension_numbers<[1], [0], [0], [1], [0, 0, 1, 1], [], []>} : vector<8x128xf32>, vector<128x128xf32>, vector<8x128xf32> -> vector<8x128xf32>
    %c128 = arith.constant 128 : index
    %c0_3 = arith.constant 0 : index
    %3 = vector.load %arg2[%c128, %c0_3] : memref<136x128xf32, #tpu.memory_space<vmem>>, vector<1x128xf32>
    %4 = vector.broadcast %3 : vector<1x128xf32> to vector<8x128xf32>
    %5 = arith.addf %2, %4 : vector<8x128xf32>
    %cst_4 = arith.constant 0.000000e+00 : f32
    %6 = vector.broadcast %cst_4 : f32 to vector<8x128xf32>
    %7 = arith.maximumf %5, %6 : vector<8x128xf32>
    %c0_5 = arith.constant 0 : index
    %c0_6 = arith.constant 0 : index
    %8 = vector.load %arg3[%c0_5, %c0_6] : memref<136x128xf32, #tpu.memory_space<vmem>>, vector<128x128xf32>
    %cst_7 = arith.constant dense<0.000000e+00> : vector<8x128xf32>
    %9 = tpu.matmul %7, %8, %cst_7 {dimension_numbers = #tpu.dot_dimension_numbers<[1], [0], [0], [1], [0, 0, 1, 1], [], []>} : vector<8x128xf32>, vector<128x128xf32>, vector<8x128xf32> -> vector<8x128xf32>
    %c128_8 = arith.constant 128 : index
    %c0_9 = arith.constant 0 : index
    %10 = vector.load %arg3[%c128_8, %c0_9] : memref<136x128xf32, #tpu.memory_space<vmem>>, vector<1x128xf32>
    %11 = vector.broadcast %10 : vector<1x128xf32> to vector<8x128xf32>
    %12 = arith.addf %9, %11 : vector<8x128xf32>
    %cst_10 = arith.constant 0.000000e+00 : f32
    %13 = vector.broadcast %cst_10 : f32 to vector<8x128xf32>
    %14 = arith.maximumf %12, %13 : vector<8x128xf32>
    %c0_11 = arith.constant 0 : index
    %c0_12 = arith.constant 0 : index
    %15 = vector.load %arg4[%c0_11, %c0_12] : memref<136x128xf32, #tpu.memory_space<vmem>>, vector<128x128xf32>
    %cst_13 = arith.constant dense<0.000000e+00> : vector<8x128xf32>
    %16 = tpu.matmul %14, %15, %cst_13 {dimension_numbers = #tpu.dot_dimension_numbers<[1], [0], [0], [1], [0, 0, 1, 1], [], []>} : vector<8x128xf32>, vector<128x128xf32>, vector<8x128xf32> -> vector<8x128xf32>
    %c128_14 = arith.constant 128 : index
    %c0_15 = arith.constant 0 : index
    %17 = vector.load %arg4[%c128_14, %c0_15] : memref<136x128xf32, #tpu.memory_space<vmem>>, vector<1x128xf32>
    %18 = vector.broadcast %17 : vector<1x128xf32> to vector<8x128xf32>
    %19 = arith.addf %16, %18 : vector<8x128xf32>
    %c0_16 = arith.constant 0 : index
    %c0_17 = arith.constant 0 : index
    %20 = vector.load %arg5[%c0_16, %c0_17] : memref<8x128xf32, #tpu.memory_space<vmem>>, vector<8x128xf32>
    tpu.vector_store %arg5[%c0_16, %c0_17], %19 {strides = array<i32>} : memref<8x128xf32, #tpu.memory_space<vmem>>, vector<8x128xf32>,
    return
  }
  func.func @transform_0(%arg0: i32) -> (i32, i32) {
    %c0_i32 = arith.constant 0 : i32
    %c0_i32_0 = arith.constant 0 : i32
    return %arg0, %c0_i32 : i32, i32
  }
  func.func @transform_1(%arg0: i32) -> (i32, i32) {
    %c0_i32 = arith.constant 0 : i32
    %c0_i32_0 = arith.constant 0 : i32
    %c0_i32_1 = arith.constant 0 : i32
    return %c0_i32, %c0_i32_0 : i32, i32
  }
  func.func @transform_2(%arg0: i32) -> (i32, i32) {
    %c0_i32 = arith.constant 0 : i32
    %c0_i32_0 = arith.constant 0 : i32
    %c0_i32_1 = arith.constant 0 : i32
    return %c0_i32, %c0_i32_0 : i32, i32
  }
  func.func @transform_3(%arg0: i32) -> (i32, i32) {
    %c0_i32 = arith.constant 0 : i32
    %c0_i32_0 = arith.constant 0 : i32
    %c0_i32_1 = arith.constant 0 : i32
    return %c0_i32, %c0_i32_0 : i32, i32
  }
  func.func @transform_4(%arg0: i32) -> (i32, i32) {
    %c0_i32 = arith.constant 0 : i32
    %c0_i32_0 = arith.constant 0 : i32
    return %arg0, %c0_i32 : i32, i32
  }
}

</mosaic_0001>

<bundles_post_ra>
// kernel: small_net_forward.1
= control target key start
LH: loop header
LB: loop body
LE: loop exit
PB: predicated region body
PF: predicated region fallthrough
CT: control target
= control target key end

     0   :  { %v459_v0 = vmov 0.0   ;;  %vm460_vm0 = vmmov 0   ;;  %s699_s1 = inlined_call_operand.vmem [shape: f32[136,128], index: 1, kind: input, shape index: {}]   ;;  %s700_s2 = inlined_call_operand.vmem [shape: f32[136,128], index: 2, kind: input, shape index: {}]   ;;  %s701_s0 = inlined_call_operand.vmem [shape: f32[8,128], index: 0, kind: input, shape index: {}]   ;;  %s702_s3 = inlined_call_operand.vmem [shape: f32[136,128], index: 3, kind: input, shape index: {}]   ;;  %s703_s4 = inlined_call_operand.vmem [shape: f32[8,128], index: 4, kind: output, shape index: {}]  }
   0x1   :  { %352 = vmatprep.subr.mxu0 %v459_v0  ;;  %v33_v1 = vld [vmem:[%s699_s1 + $0x78] sm:$0xff]  ;;  %v32_v2 = vld [vmem:[%s699_s1 + $0x70] sm:$0xff]  ;;  %384 = vmatprep.mubr.msk.f32.mxu0 %vm460_vm0, %v459_v0  ;;  %v31_v3 = vld [vmem:[%s699_s1 + $0x68] sm:$0xff] }
   0x2   :  { %353 = vmatpush3.msra.mxu0 %v33_v1  ;;  %387 = vmatprep.subr.mxu1 %v459_v0  ;;  %v30_v4 = vld [vmem:[%s699_s1 + $0x60] sm:$0xff]  ;;  %v125_v5 = vld [vmem:[%s700_s2 + $0x78] sm:$0xff]  ;;  %v124_v7 = vld [vmem:[%s700_s2 + $0x70] sm:$0xff] }
   0x3   :  { %354 = vmatprep.subr.mxu0 %v459_v0  ;;  %419 = vmatprep.mubr.msk.f32.mxu1 %vm460_vm0, %v459_v0  ;;  %v29_v6 = vld [vmem:[%s699_s1 + $0x58] sm:$0xff]  ;;  %v123_v8 = vld [vmem:[%s700_s2 + $0x68] sm:$0xff]  ;;  %v28_v9 = vld [vmem:[%s699_s1 + $0x50] sm:$0xff] }
   0x4   :  { %355 = vmatpush3.msra.mxu0 %v32_v2  ;;  %388 = vmatpush3.msra.mxu1 %v125_v5  ;;  %v122_v10 = vld [vmem:[%s700_s2 + $0x60] sm:$0xff]  ;;  %v27_v11 = vld [vmem:[%s699_s1 + $0x48] sm:$0xff]  ;;  %v121_v12 = vld [vmem:[%s700_s2 + $0x58] sm:$0xff] }
   0x5   :  { %356 = vmatprep.subr.mxu0 %v459_v0  ;;  %389 = vmatprep.subr.mxu1 %v459_v0  ;;  %v26_v13 = vld [vmem:[%s699_s1 + $0x40] sm:$0xff]  ;;  %v120_v14 = vld [vmem:[%s700_s2 + $0x50] sm:$0xff]  ;;  %v25_v15 = vld [vmem:[%s699_s1 + $0x38] sm:$0xff] }
   0x6   :  { %357 = vmatpush3.msra.mxu0 %v31_v3  ;;  %390 = vmatpush3.msra.mxu1 %v124_v7  ;;  %v119_v16 = vld [vmem:[%s700_s2 + $0x48] sm:$0xff]  ;;  %v24_v17 = vld [vmem:[%s699_s1 + $0x30] sm:$0xff]  ;;  %v118_v18 = vld [vmem:[%s700_s2 + $0x40] sm:$0xff] }
   0x7   :  { %358 = vmatprep.subr.mxu0 %v459_v0  ;;  %391 = vmatprep.subr.mxu1 %v459_v0  ;;  %v23_v19 = vld [vmem:[%s699_s1 + $0x28] sm:$0xff]  ;;  %v117_v20 = vld [vmem:[%s700_s2 + $0x38] sm:$0xff]  ;;  %v22_v21 = vld [vmem:[%s699_s1 + $0x20] sm:$0xff] }
   0x8   :  { %359 = vmatpush3.msra.mxu0 %v30_v4  ;;  %392 = vmatpush3.msra.mxu1 %v123_v8  ;;  %v116_v22 = vld [vmem:[%s700_s2 + $0x30] sm:$0xff]  ;;  %v21_v23 = vld [vmem:[%s699_s1 + $0x18] sm:$0xff]  ;;  %v115_v24 = vld [vmem:[%s700_s2 + $0x28] sm:$0xff] }
   0x9   :  { %360 = vmatprep.subr.mxu0 %v459_v0  ;;  %393 = vmatprep.subr.mxu1 %v459_v0  ;;  %v20_v25 = vld [vmem:[%s699_s1 + $0x10] sm:$0xff]  ;;  %v114_v26 = vld [vmem:[%s700_s2 + $0x20] sm:$0xff]  ;;  %v19_v27 = vld [vmem:[%s699_s1 + $0x8] sm:$0xff] }
   0xa   :  { %361 = vmatpush3.msra.mxu0 %v29_v6  ;;  %394 = vmatpush3.msra.mxu1 %v122_v10  ;;  %v113_v28 = vld [vmem:[%s700_s2 + $0x18] sm:$0xff]  ;;  %v18_v29 = vld [vmem:[%s699_s1] sm:$0xff]  ;;  %v112_v31 = vld [vmem:[%s700_s2 + $0x10] sm:$0xff] }
   0xb   :  { %362 = vmatprep.subr.mxu0 %v459_v0  ;;  %395 = vmatprep.subr.mxu1 %v459_v0  ;;  %v17_v30 = vld [vmem:[%s701_s0] sm:$0xff]  ;;  %v111_v32 = vld [vmem:[%s700_s2 + $0x8] sm:$0xff]  ;;  %v217_v34 = vld [vmem:[%s702_s3 + $0x78] sm:$0xff] }
   0xc   :  { %363 = vmatpush3.msra.mxu0 %v28_v9  ;;  %396 = vmatpush3.msra.mxu1 %v121_v12  ;;  %v110_v33 = vld [vmem:[%s700_s2] sm:$0xff]  ;;  %v216_v35 = vld [vmem:[%s702_s3 + $0x70] sm:$0xff]  ;;  %v215_v36 = vld [vmem:[%s702_s3 + $0x68] sm:$0xff] }
   0xd   :  { %364 = vmatprep.subr.mxu0 %v459_v0  ;;  %397 = vmatprep.subr.mxu1 %v459_v0  ;;  %v214_v37 = vld [vmem:[%s702_s3 + $0x60] sm:$0xff]  ;;  %v213_v38 = vld [vmem:[%s702_s3 + $0x58] sm:$0xff]  ;;  %v212_v39 = vld [vmem:[%s702_s3 + $0x50] sm:$0xff] }
   0xe   :  { %365 = vmatpush3.msra.mxu0 %v27_v11  ;;  %398 = vmatpush3.msra.mxu1 %v120_v14  ;;  %v211_v40 = vld [vmem:[%s702_s3 + $0x48] sm:$0xff]  ;;  %v210_v41 = vld [vmem:[%s702_s3 + $0x40] sm:$0xff]  ;;  %v209_v42 = vld [vmem:[%s702_s3 + $0x38] sm:$0xff] }
   0xf   :  { %366 = vmatprep.subr.mxu0 %v459_v0  ;;  %399 = vmatprep.subr.mxu1 %v459_v0  ;;  %v208_v43 = vld [vmem:[%s702_s3 + $0x30] sm:$0xff]  ;;  %v207_v44 = vld [vmem:[%s702_s3 + $0x28] sm:$0xff]  ;;  %v206_v45 = vld [vmem:[%s702_s3 + $0x20] sm:$0xff] }
  0x10   :  { %367 = vmatpush3.msra.mxu0 %v26_v13  ;;  %400 = vmatpush3.msra.mxu1 %v119_v16  ;;  %v205_v46 = vld [vmem:[%s702_s3 + $0x18] sm:$0xff]  ;;  %v298_v47 = vld [vmem:[%s699_s1 + $0x80] ss:$0 sm:$0xff]  ;;  %v204_v52 = vld [vmem:[%s702_s3 + $0x10] sm:$0xff] }
  0x11   :  { %368 = vmatprep.subr.mxu0 %v459_v0  ;;  %401 = vmatprep.subr.mxu1 %v459_v0  ;;  %v203_v53 = vld [vmem:[%s702_s3 + $0x8] sm:$0xff]  ;;  %v202_v54 = vld [vmem:[%s702_s3] sm:$0xff] }
  0x12   :  { %369 = vmatpush3.msra.mxu0 %v25_v15  ;;  %402 = vmatpush3.msra.mxu1 %v118_v18  ;;  %v299_v55 = vld [vmem:[%s700_s2 + $0x80] ss:$0 sm:$0xff] }
  0x13   :  { %370 = vmatprep.subr.mxu0 %v459_v0  ;;  %403 = vmatprep.subr.mxu1 %v459_v0  ;;  %v300_v60 = vld [vmem:[%s702_s3 + $0x80] ss:$0 sm:$0xff] }
  0x14   :  { %371 = vmatpush3.msra.mxu0 %v24_v17  ;;  %404 = vmatpush3.msra.mxu1 %v117_v20 }
  0x15   :  { %372 = vmatprep.subr.mxu0 %v459_v0  ;;  %405 = vmatprep.subr.mxu1 %v459_v0 }
  0x16   :  { %373 = vmatpush3.msra.mxu0 %v23_v19  ;;  %406 = vmatpush3.msra.mxu1 %v116_v22 }
  0x17   :  { %374 = vmatprep.subr.mxu0 %v459_v0  ;;  %407 = vmatprep.subr.mxu1 %v459_v0 }
  0x18   :  { %375 = vmatpush3.msra.mxu0 %v22_v21  ;;  %408 = vmatpush3.msra.mxu1 %v115_v24 }
  0x19   :  { %376 = vmatprep.subr.mxu0 %v459_v0  ;;  %409 = vmatprep.subr.mxu1 %v459_v0 }
  0x1a   :  { %377 = vmatpush3.msra.mxu0 %v21_v23  ;;  %410 = vmatpush3.msra.mxu1 %v114_v26 }
  0x1b   :  { %378 = vmatprep.subr.mxu0 %v459_v0  ;;  %411 = vmatprep.subr.mxu1 %v459_v0 }
  0x1c   :  { %379 = vmatpush3.msra.mxu0 %v20_v25  ;;  %412 = vmatpush3.msra.mxu1 %v113_v28 }
  0x1d   :  { %380 = vmatprep.subr.mxu0 %v459_v0  ;;  %413 = vmatprep.subr.mxu1 %v459_v0 }
  0x1e   :  { %381 = vmatpush3.msra.mxu0 %v19_v27  ;;  %414 = vmatpush3.msra.mxu1 %v112_v31 }
  0x1f   :  { %382 = vmatprep.subr.mxu0 %v459_v0  ;;  %415 = vmatprep.subr.mxu1 %v459_v0 }
  0x20   :  { %383 = vmatpush3.msra.mxu0 %v18_v29  ;;  %416 = vmatpush3.msra.mxu1 %v111_v32 }
  0x21   :  { %385 = vmatmul.mubr.f32.vlgmr.msra.gmra.mxu0 %v17_v30  ;;  %422 = vmatprep.subr.mxu0 %v459_v0 }
  0x22   :  { %454 = vmatprep.mubr.msk.f32.mxu0 %vm460_vm0, %v459_v0  ;;  %417 = vmatprep.subr.mxu1 %v459_v0 }
  0x23   :  { %418 = vmatpush3.msra.mxu1 %v110_v33  ;;  %423 = vmatpush3.msra.mxu0 %v217_v34 }
  0x24   :  { %424 = vmatprep.subr.mxu0 %v459_v0 }
  0x25   :  { %425 = vmatpush3.msra.mxu0 %v216_v35 }
  0x26   :  { %426 = vmatprep.subr.mxu0 %v459_v0 }
  0x27   :  { %427 = vmatpush3.msra.mxu0 %v215_v36 }
  0x28   :  { %428 = vmatprep.subr.mxu0 %v459_v0 }
  0x29   :  { %429 = vmatpush3.msra.mxu0 %v214_v37 }
  0x2a   :  { %430 = vmatprep.subr.mxu0 %v459_v0 }
  0x2b   :  { %431 = vmatpush3.msra.mxu0 %v213_v38 }
  0x2c   :  { %432 = vmatprep.subr.mxu0 %v459_v0 }
  0x2d   :  { %433 = vmatpush3.msra.mxu0 %v212_v39 }
  0x2e   :  { %434 = vmatprep.subr.mxu0 %v459_v0 }
  0x2f   :  { %435 = vmatpush3.msra.mxu0 %v211_v40 }
  0x30   :  { %436 = vmatprep.subr.mxu0 %v459_v0 }
  0x31   :  { %437 = vmatpush3.msra.mxu0 %v210_v41 }
  0x32   :  { %438 = vmatprep.subr.mxu0 %v459_v0 }
  0x33   :  { %439 = vmatpush3.msra.mxu0 %v209_v42 }
  0x34   :  { %440 = vmatprep.subr.mxu0 %v459_v0 }
  0x35   :  { %441 = vmatpush3.msra.mxu0 %v208_v43 }
  0x36   :  { %442 = vmatprep.subr.mxu0 %v459_v0 }
  0x37   :  { %443 = vmatpush3.msra.mxu0 %v207_v44 }
  0x38   :  { %444 = vmatprep.subr.mxu0 %v459_v0 }
  0x39   :  { %445 = vmatpush3.msra.mxu0 %v206_v45 }
  0x3a   :  { %446 = vmatprep.subr.mxu0 %v459_v0 }
  0x3b   :  { %447 = vmatpush3.msra.mxu0 %v205_v46 }
  0x3c   :  { %448 = vmatprep.subr.mxu0 %v459_v0 }
  0x3d   :  { %449 = vmatpush3.msra.mxu0 %v204_v52 }
  0x3e   :  { %450 = vmatprep.subr.mxu0 %v459_v0 }
  0x3f   :  { %451 = vmatpush3.msra.mxu0 %v203_v53 }
  0x40   :  { %452 = vmatprep.subr.mxu0 %v459_v0 }
  0x41   :  { %453 = vmatpush3.msra.mxu0 %v202_v54 }
  0xe1   :  { %v105_v48 = vpop.f32.mrf.mxu0 }
  0xe2   :  { %v106_v49 = vadd.f32 %v298_v47, %v105_v48 }
  0xe3   :  { %v386_v50 = vpop.f32.mrf.mxu0 }
  0xe4   :  { %v109_v51 = vmax.f32 %v106_v49, 0.0 }
  0xe6   :  { %420 = vmatmul.mubr.f32.vlgmr.msra.gmra.mxu1 %v109_v51 }
 0x1a6   :  { %v197_v56 = vpop.f32.mrf.mxu1 }
 0x1a7   :  { %v198_v57 = vadd.f32 %v299_v55, %v197_v56 }
 0x1a8   :  { %v421_v58 = vpop.f32.mrf.mxu1 }
 0x1a9   :  { %v201_v59 = vmax.f32 %v198_v57, 0.0 }
 0x1ab   :  { %455 = vmatmul.mubr.f32.vlgmr.msra.gmra.mxu0 %v201_v59 }
 0x26b   :  { %v289_v61 = vpop.f32.mrf.mxu0 }
 0x26c   :  { %v290_v62 = vadd.f32 %v300_v60, %v289_v61 }
 0x26d   :  { %v456_v63 = vpop.f32.mrf.mxu0 }
 0x26e   :  { %293 = vst [vmem:[%s703_s4] sm:$0xff] %v290_v62 }

</bundles_post_ra>
